<compile_context>
chip_gen: v6e
topology: v6e:2x2x1
jax: 0.10.0
libtpu: 0.0.40
codegen_flags: <defaults>
</compile_context>

<pallas_src>
import functools

import jax
import jax.numpy as jnp
from jax.experimental import pallas as pl
from jax.experimental.pallas import tpu as pltpu


# ----------------------------------------------------------------------------
# Fused Pallas kernel:  y = (relu(x @ W1 + b1) @ W2 + b2) * scale
# ----------------------------------------------------------------------------
def _fused_mlp_kernel(x_ref, w1_ref, b1_ref, w2_ref, b2_ref, scale_ref, o_ref):
    x = x_ref[...]                                       # [BM, Din]  bf16
    # fc1: bf16 MXU matmul, f32 accumulate; bias + ReLU in f32 (VPU).
    h = jnp.dot(x, w1_ref[...], preferred_element_type=jnp.float32)   # [BM, Hp]
    h = jnp.maximum(h + b1_ref[...], 0.0)
    # fc2: hidden stays resident in vregs (no HBM roundtrip between layers).
    y = jnp.dot(h.astype(jnp.bfloat16), w2_ref[...],
                preferred_element_type=jnp.float32)                   # [BM, Dp]
    # bias + buffer `scale` multiply, f32 epilogue.
    y = (y + b2_ref[...]) * scale_ref[0]
    o_ref[...] = y.astype(o_ref.dtype)


def _round_up(x, m):
    return (x + m - 1) // m * m


def fused_mlp(x, w1, b1, w2, b2, scale):
    """Fused MLP forward.

    x: [B, Din] f32, w1: [H, Din], b1: [H], w2: [Dout, H], b2: [Dout]
    (PyTorch nn.Linear layout), scale: scalar buffer.  Returns [B, Dout] f32.
    """
    B, Din = x.shape
    H = w1.shape[0]
    Dout = w2.shape[0]

    # Lane-dense padding (128-lane output slabs -> unmasked stores, full MXU
    # column usage).
    Hp = _round_up(H, 128)
    Dp = _round_up(Dout, 128)

    # Batch tile: multiple of 16 (bf16 sublane packing); grid over batch tiles.
    BM = 256 if B > 256 else _round_up(max(B, 16), 16)
    Bp = _round_up(B, BM)

    # One-time (trace-time) layout prep, OUTSIDE the kernel:
    #   transpose to [in, out], zero-pad out-dims to 128 lanes, cast to bf16.
    w1p = jnp.zeros((Din, Hp), jnp.float32).at[:, :H].set(w1.T).astype(jnp.bfloat16)
    b1p = jnp.zeros((1, Hp), jnp.float32).at[0, :H].set(b1)
    w2p = jnp.zeros((Hp, Dp), jnp.float32).at[:H, :Dout].set(w2.T).astype(jnp.bfloat16)
    b2p = jnp.zeros((1, Dp), jnp.float32).at[0, :Dout].set(b2)
    xp = jnp.zeros((Bp, Din), jnp.float32).at[:B, :].set(x).astype(jnp.bfloat16)
    scale1 = jnp.asarray(scale, jnp.float32).reshape(1)

    grid = (Bp // BM,)
    out = pl.pallas_call(
        _fused_mlp_kernel,
        out_shape=jax.ShapeDtypeStruct((Bp, Dp), jnp.float32),
        grid=grid,
        in_specs=[
            pl.BlockSpec((BM, Din), lambda i: (i, 0)),      # x: batch-tiled
            pl.BlockSpec((Din, Hp), lambda i: (0, 0)),      # W1 (revisited)
            pl.BlockSpec((1, Hp), lambda i: (0, 0)),        # b1 (revisited)
            pl.BlockSpec((Hp, Dp), lambda i: (0, 0)),       # W2 (revisited)
            pl.BlockSpec((1, Dp), lambda i: (0, 0)),        # b2 (revisited)
            pl.BlockSpec(memory_space=pltpu.MemorySpace.SMEM),  # scale scalar
        ],
        out_specs=pl.BlockSpec((BM, Dp), lambda i: (i, 0)),
        compiler_params=pltpu.CompilerParams(
            dimension_semantics=("parallel",)),
    )(xp, w1p, b1p, w2p, b2p, scale1)

    return out[:B, :Dout]


# ----------------------------------------------------------------------------
# Synthetic inner "torch.nn.Module" (stand-in for the wrapped model `m`).
# ----------------------------------------------------------------------------
DIN, HIDDEN, DOUT = 32, 64, 16


class SimpleMLP:
    """Stand-in for the wrapped torch module: fc1 -> ReLU -> fc2, with a
    non-trainable `scale` buffer.  Params initialized deterministically and
    stored in the PyTorch nn.Linear layout [out_features, in_features]."""

    def __init__(self):
        key = jax.random.PRNGKey(0)
        k1, k2, k3, k4 = jax.random.split(key, 4)
        # "Parameters" (requires_grad analog)
        self.fc1_weight = 0.05 * jax.random.normal(k1, (HIDDEN, DIN), jnp.float32)
        self.fc1_bias = 0.05 * jax.random.normal(k2, (HIDDEN,), jnp.float32)
        self.fc2_weight = 0.05 * jax.random.normal(k3, (DOUT, HIDDEN), jnp.float32)
        self.fc2_bias = 0.05 * jax.random.normal(k4, (DOUT,), jnp.float32)
        # "Buffer" (plain tensor, no grad)
        self.scale = jnp.asarray(2.0, jnp.float32)
        self._param_names = {"fc1_weight", "fc1_bias", "fc2_weight", "fc2_bias"}

    def forward(self, params, buffers, x):
        # Equivalent of the reparametrized torch forward under
        # torch_stateless._reparametrize_module: all state comes from the
        # params/buffers dicts passed in.  The whole forward is one fused
        # Pallas kernel (fc1+ReLU+fc2+scale).
        return fused_mlp(
            x,
            params["fc1_weight"], params["fc1_bias"],
            params["fc2_weight"], params["fc2_bias"],
            buffers["scale"],
        )


def extract_all_buffers(m):
    """JAX analog of interop.extract_all_buffers: split module attributes into
    trainable params and plain-tensor buffers."""
    params, buffers = {}, {}
    for k in dir(m):
        try:
            v = getattr(m, k)
        except Exception:
            continue
        if not isinstance(v, jax.Array):
            continue
        if k in getattr(m, "_param_names", set()):
            params[k] = v
        else:
            buffers[k] = v
    return params, buffers


# ----------------------------------------------------------------------------
# JittableModule: mirrors torchax.interop.JittableModule semantics in JAX.
# ----------------------------------------------------------------------------
class JittableModule:

    def __init__(self, m, extra_jit_args={}):
        self.params, self.buffers = extract_all_buffers(m)
        self._model = m
        self._jitted = {}
        self._extra_jit_args = dict(extra_jit_args)

    def __call__(self, *args, **kwargs):
        return self.forward(*args, **kwargs)

    def functional_call(self, method_name, params, buffers, *args, **kwargs):
        # torch version reparametrizes the module with params|buffers; here the
        # functional inner model takes them explicitly.
        # TODO(synk): torch_stateless._reparametrize_module / torchax tensor
        # view conversion (call_torch/call_jax, _torch_view/_jax_view) are
        # Python interop glue with no Pallas/JAX compute equivalent; modeled by
        # explicit dict passing.
        return getattr(self._model, method_name)(params, buffers, *args, **kwargs)

    def forward(self, *args, **kwargs):
        if "forward" not in self._jitted:
            jitted = jax.jit(
                functools.partial(self.functional_call, "forward"),
                **self._extra_jit_args)

            def jitted_forward(*a, **kw):
                return jitted(self.params, self.buffers, *a, **kw)

            self._jitted["forward"] = jitted_forward
        return self._jitted["forward"](*args, **kwargs)

    def make_jitted(self, key):
        jitted = jax.jit(functools.partial(self.functional_call, key),
                         **self._extra_jit_args)

        def call(*a, **kw):
            return jitted(self.params, self.buffers, *a, **kw)

        self._jitted[key] = call


# ----------------------------------------------------------------------------
if __name__ == "__main__":
    batch = 8
    x = jax.random.normal(jax.random.PRNGKey(0), (batch, DIN), jnp.float32)

    model = SimpleMLP()
    jm = JittableModule(model)

    out = jm(x)
    out = jax.block_until_ready(out)

    # Pure-JAX f32 reference of the same forward for a correctness check.
    # Tolerance loosened because the kernel feeds the MXU with bf16 operands
    # (f32 accumulation / f32 epilogue).
    p, b = jm.params, jm.buffers
    h_ref = jnp.maximum(x @ p["fc1_weight"].T + p["fc1_bias"], 0.0)
    y_ref = (h_ref @ p["fc2_weight"].T + p["fc2_bias"]) * b["scale"]

    assert out.shape == (batch, DOUT), out.shape
    assert out.dtype == jnp.float32, out.dtype
    assert jnp.allclose(out, y_ref, atol=2e-2, rtol=2e-2), "mismatch vs reference"

    print("KERNEL_OK")
</pallas_src>

<mosaic_0001>
module attributes {stable_mosaic.version = 11 : i64} {
  func.func @_fused_mlp_kernel(%arg0: i32, %arg1: memref<16x32xbf16, #tpu.memory_space<vmem>>, %arg2: memref<32x128xbf16, #tpu.memory_space<vmem>>, %arg3: memref<1x128xf32, #tpu.memory_space<vmem>>, %arg4: memref<128x128xbf16, #tpu.memory_space<vmem>>, %arg5: memref<1x128xf32, #tpu.memory_space<vmem>>, %arg6: memref<1xf32, #tpu.memory_space<smem>>, %arg7: memref<16x128xf32, #tpu.memory_space<vmem>>) attributes {dimension_semantics = [#tpu.dimension_semantics<parallel>], iteration_bounds = array<i64: 1>, scalar_prefetch = 0 : i64, scratch_operands = 0 : i64, tpu.core_type = #tpu.core_type<tc>, window_params = [{transform_indices = @transform_0, window_bounds = array<i64: 16, 32>}, {pipeline_mode = #tpu.pipeline_mode<synchronous>, transform_indices = @transform_1, window_bounds = array<i64: 32, 128>}, {pipeline_mode = #tpu.pipeline_mode<synchronous>, transform_indices = @transform_2, window_bounds = array<i64: 1, 128>}, {pipeline_mode = #tpu.pipeline_mode<synchronous>, transform_indices = @transform_3, window_bounds = array<i64: 128, 128>}, {pipeline_mode = #tpu.pipeline_mode<synchronous>, transform_indices = @transform_4, window_bounds = array<i64: 1, 128>}, {transform_indices = @transform_5, window_bounds = array<i64: 1>}, {transform_indices = @transform_6, window_bounds = array<i64: 16, 128>}]} {
    %c0 = arith.constant 0 : index
    %c0_0 = arith.constant 0 : index
    %0 = vector.load %arg1[%c0, %c0_0] : memref<16x32xbf16, #tpu.memory_space<vmem>>, vector<16x32xbf16>
    %c0_1 = arith.constant 0 : index
    %c0_2 = arith.constant 0 : index
    %1 = vector.load %arg2[%c0_1, %c0_2] : memref<32x128xbf16, #tpu.memory_space<vmem>>, vector<32x128xbf16>
    %cst = arith.constant dense<0.000000e+00> : vector<16x128xf32>
    %2 = tpu.matmul %0, %1, %cst {dimension_numbers = #tpu.dot_dimension_numbers<[1], [0], [0], [1], [0, 0, 1, 1], [], []>} : vector<16x32xbf16>, vector<32x128xbf16>, vector<16x128xf32> -> vector<16x128xf32>
    %c0_3 = arith.constant 0 : index
    %c0_4 = arith.constant 0 : index
    %3 = vector.load %arg3[%c0_3, %c0_4] : memref<1x128xf32, #tpu.memory_space<vmem>>, vector<1x128xf32>
    %4 = vector.broadcast %3 : vector<1x128xf32> to vector<16x128xf32>
    %5 = arith.addf %2, %4 : vector<16x128xf32>
    %cst_5 = arith.constant 0.000000e+00 : f32
    %6 = vector.broadcast %cst_5 : f32 to vector<16x128xf32>
    %7 = arith.maximumf %5, %6 : vector<16x128xf32>
    %8 = arith.truncf %7 : vector<16x128xf32> to vector<16x128xbf16>
    %c0_6 = arith.constant 0 : index
    %c0_7 = arith.constant 0 : index
    %9 = vector.load %arg4[%c0_6, %c0_7] : memref<128x128xbf16, #tpu.memory_space<vmem>>, vector<128x128xbf16>
    %cst_8 = arith.constant dense<0.000000e+00> : vector<16x128xf32>
    %10 = tpu.matmul %8, %9, %cst_8 {dimension_numbers = #tpu.dot_dimension_numbers<[1], [0], [0], [1], [0, 0, 1, 1], [], []>} : vector<16x128xbf16>, vector<128x128xbf16>, vector<16x128xf32> -> vector<16x128xf32>
    %c0_9 = arith.constant 0 : index
    %c0_10 = arith.constant 0 : index
    %11 = vector.load %arg5[%c0_9, %c0_10] : memref<1x128xf32, #tpu.memory_space<vmem>>, vector<1x128xf32>
    %12 = vector.broadcast %11 : vector<1x128xf32> to vector<16x128xf32>
    %13 = arith.addf %10, %12 : vector<16x128xf32>
    %c0_11 = arith.constant 0 : index
    %14 = memref.load %arg6[%c0_11] : memref<1xf32, #tpu.memory_space<smem>>
    %15 = vector.broadcast %14 : f32 to vector<16x128xf32>
    %16 = arith.mulf %13, %15 : vector<16x128xf32>
    %c0_12 = arith.constant 0 : index
    %c0_13 = arith.constant 0 : index
    %17 = vector.load %arg7[%c0_12, %c0_13] : memref<16x128xf32, #tpu.memory_space<vmem>>, vector<16x128xf32>
    tpu.vector_store %arg7[%c0_12, %c0_13], %16 {strides = array<i32>} : memref<16x128xf32, #tpu.memory_space<vmem>>, vector<16x128xf32>,
    return
  }
  func.func @transform_0(%arg0: i32) -> (i32, i32) {
    %c0_i32 = arith.constant 0 : i32
    %c0_i32_0 = arith.constant 0 : i32
    return %arg0, %c0_i32 : i32, i32
  }
  func.func @transform_1(%arg0: i32) -> (i32, i32) {
    %c0_i32 = arith.constant 0 : i32
    %c0_i32_0 = arith.constant 0 : i32
    %c0_i32_1 = arith.constant 0 : i32
    return %c0_i32, %c0_i32_0 : i32, i32
  }
  func.func @transform_2(%arg0: i32) -> (i32, i32) {
    %c0_i32 = arith.constant 0 : i32
    %c0_i32_0 = arith.constant 0 : i32
    %c0_i32_1 = arith.constant 0 : i32
    return %c0_i32, %c0_i32_0 : i32, i32
  }
  func.func @transform_3(%arg0: i32) -> (i32, i32) {
    %c0_i32 = arith.constant 0 : i32
    %c0_i32_0 = arith.constant 0 : i32
    %c0_i32_1 = arith.constant 0 : i32
    return %c0_i32, %c0_i32_0 : i32, i32
  }
  func.func @transform_4(%arg0: i32) -> (i32, i32) {
    %c0_i32 = arith.constant 0 : i32
    %c0_i32_0 = arith.constant 0 : i32
    %c0_i32_1 = arith.constant 0 : i32
    return %c0_i32, %c0_i32_0 : i32, i32
  }
  func.func @transform_5(%arg0: i32) -> i32 {
    %c0_i32 = arith.constant 0 : i32
    %c0_i32_0 = arith.constant 0 : i32
    return %c0_i32 : i32
  }
  func.func @transform_6(%arg0: i32) -> (i32, i32) {
    %c0_i32 = arith.constant 0 : i32
    %c0_i32_0 = arith.constant 0 : i32
    return %arg0, %c0_i32 : i32, i32
  }
}

</mosaic_0001>

<bundles_post_ra>
// kernel: functional_call.1
= control target key start
LH: loop header
LB: loop body
LE: loop exit
PB: predicated region body
PF: predicated region fallthrough
CT: control target
= control target key end

     0   :  { %v292_v0 = vmov 0.0   ;;  %vm293_vm0 = vmmov 0   ;;  %vm55_vm1 = vcmask 261120   ;;  %s377_s1 = inlined_call_operand.vmem [shape: bf16[32,128], index: 1, kind: input, shape index: {}]   ;;  %s378_s3 = inlined_call_operand.vmem [shape: bf16[128,128], index: 3, kind: input, shape index: {}]   ;;  %s379_s0 = inlined_call_operand.vmem [shape: bf16[16,32], index: 0, kind: input, shape index: {}]   ;;  %s380_s2 = inlined_call_operand.vmem [shape: f32[1,128], index: 2, kind: input, shape index: {}]   ;;  %s381_s4 = inlined_call_operand.vmem [shape: f32[1,128], index: 4, kind: input, shape index: {}]   ;;  %s382_s5 = inlined_call_operand.<no memory space> [shape: f32[1], index: 5, kind: input, shape index: {}]   ;;  %s383_s6 = inlined_call_operand.vmem [shape: f32[16,128], index: 6, kind: output, shape index: {}]  }
   0x1   :  { %251 = vmatprep.subr.bf16.mxu0 %v292_v0  ;;  %v281_v1 = vld [vmem:[%s377_s1 + $0x8] sm:$0xff]   ;;  %255 = vmatprep.mubr.msk.bf16.mxu0 %vm293_vm0, %v292_v0  ;;  %v282_v2 = vld [vmem:[%s377_s1] sm:$0xff]   ;;  %v284_v3 = vld [vmem:[%s378_s3 + $0x38] sm:$0xff]   ;;  %v216_v24 = vstv %s382_s5 }
   0x2   :  { %259 = vmatprep.subr.bf16.mxu1 %v292_v0  ;;  %275 = vmatprep.mubr.msk.bf16.mxu1 %vm293_vm0, %v292_v0  ;;  %v283_v4 = vld [vmem:[%s379_s0] sm:$0xff]   ;;  %v285_v5 = vld [vmem:[%s378_s3 + $0x30] sm:$0xff]   ;;  %v286_v6 = vld [vmem:[%s378_s3 + $0x28] sm:$0xff]  }
   0x3   :  { %252 = vmatpush3.bf16.msra.mxu0 %v281_v1  ;;  %260 = vmatpush3.bf16.msra.mxu1 %v284_v3  ;;  %v287_v7 = vld [vmem:[%s378_s3 + $0x20] sm:$0xff]   ;;  %v288_v8 = vld [vmem:[%s378_s3 + $0x18] sm:$0xff]   ;;  %v289_v9 = vld [vmem:[%s378_s3 + $0x10] sm:$0xff]  }
   0x4   :  { %253 = vmatprep.subr.bf16.mxu0 %v292_v0  ;;  %261 = vmatprep.subr.bf16.mxu1 %v292_v0  ;;  %v290_v10 = vld [vmem:[%s378_s3 + $0x8] sm:$0xff]   ;;  %v291_v11 = vld [vmem:[%s378_s3] sm:$0xff]  }
   0x5   :  { %v225_v12 = vld [vmem:[%s380_s2] ss:$0 sm:$0xff] }
   0x6   :  { %v230_v22 = vld [vmem:[%s381_s4] ss:$0 sm:$0xff] }
   0x7   :  { %254 = vmatpush3.bf16.msra.mxu0 %v282_v2  ;;  %262 = vmatpush3.bf16.msra.mxu1 %v285_v5 }
   0x8   :  { %263 = vmatprep.subr.bf16.mxu1 %v292_v0 }
   0xa   :  { %256 = vmatmul.mubr.msk.bf16.vlgmr.msra.gmra.mxu0 %vm55_vm1, %v283_v4 }
   0xb   :  { %264 = vmatpush3.bf16.msra.mxu1 %v286_v6 }
   0xc   :  { %265 = vmatprep.subr.bf16.mxu1 %v292_v0 }
   0xf   :  { %266 = vmatpush3.bf16.msra.mxu1 %v287_v7 }
  0x10   :  { %267 = vmatprep.subr.bf16.mxu1 %v292_v0 }
  0x13   :  { %268 = vmatpush3.bf16.msra.mxu1 %v288_v8 }
  0x14   :  { %269 = vmatprep.subr.bf16.mxu1 %v292_v0 }
  0x17   :  { %270 = vmatpush3.bf16.msra.mxu1 %v289_v9 }
  0x18   :  { %271 = vmatprep.subr.bf16.mxu1 %v292_v0 }
  0x1b   :  { %272 = vmatpush3.bf16.msra.mxu1 %v290_v10 }
  0x1c   :  { %273 = vmatprep.subr.bf16.mxu1 %v292_v0 }
  0x1f   :  { %274 = vmatpush3.bf16.msra.mxu1 %v291_v11 }
  0xca   :  { %v93_v13 = vpop.f32.mrf.mxu0 }
  0xcb   :  { %v94_v15 = vadd.f32 %v225_v12, %v93_v13 }
  0xcc   :  { %v257_v14 = vpop.f32.mrf.mxu0 }
  0xcd   :  { %v100_v19 = vmax.f32 %v94_v15, 0.0 }
  0xce   :  { %v96_v16 = vpop.f32.mrf.mxu0 }
  0xcf   :  { %v97_v17 = vadd.f32 %v225_v12, %v96_v16 }
  0xd0   :  { %v258_v18 = vpop.f32.mrf.mxu0 }
  0xd1   :  { %v101_v20 = vmax.f32 %v97_v17, 0.0 }
  0xd3   :  { %v102_v21 = vpack.c.bf16 %v101_v20, %v100_v19 }
  0xd5   :  { %276 = vmatmul.mubr.bf16.vlgmr.msra.gmra.mxu1 %v102_v21 }
 0x195   :  { %v208_v23 = vpop.f32.mrf.mxu1 }
 0x196   :  { %v209_v25 = vadd.f32 %v230_v22, %v208_v23 }
 0x197   :  { %v277_v26 = vpop.f32.mrf.mxu1 }
 0x198   :  { %v217_v27 = vmul.f32 %v216_v24, %v209_v25 }
 0x199   :  { %v211_v28 = vpop.f32.mrf.mxu1 }
 0x19a   :  { %219 = vst [vmem:[%s383_s6] sm:$0xff] %v217_v27  ;;  %v212_v29 = vadd.f32 %v230_v22, %v211_v28 }
 0x19b   :  { %v278_v30 = vpop.f32.mrf.mxu1 }
 0x19c   :  { %v218_v31 = vmul.f32 %v216_v24, %v212_v29 }
 0x19e   :  { %220 = vst [vmem:[%s383_s6 + $0x8] sm:$0xff] %v218_v31 }

</bundles_post_ra>
